<compile_context>
chip_gen: v5e
topology: v5e:2x2
jax: 0.10.0
libtpu: 0.0.40
codegen_flags: <defaults>
</compile_context>

<pallas_src>
import math

import jax
import jax.numpy as jnp
from jax.experimental import pallas as pl
from jax.experimental.pallas import tpu as pltpu


def _linear_kernel(x_ref, w_ref, o_ref):
    # x_ref: (tile_rows, G*K), w_ref: (G*K, G*N), o_ref: (tile_rows, G*N)
    o_ref[...] = jnp.dot(
        x_ref[...], w_ref[...], preferred_element_type=jnp.float32
    ).astype(o_ref.dtype)


def _pick_group(d_model: int, max_ng: int = 512) -> int:
    """Smallest G with (G * d_model) % 128 == 0, capped so G*d_model <= max_ng."""
    g = 128 // math.gcd(d_model, 128)
    if g > 1 and g * d_model > max_ng:
        return 1
    return g


def prepare_time_feature_weight(weight):
    """One-off weight prep (precompute/cache per layer outside the hot path).

    weight: (d_model, d_inp), PyTorch nn.Linear layout.
    Returns (w_bd, G): block-diagonal (G*d_inp, G*d_model) weight holding G
    copies of W^T on the diagonal, so G consecutive input rows share a single
    lane-dense output row.  For G == 1 this is just W^T.
    """
    d_model, d_inp = weight.shape
    G = _pick_group(d_model)
    if G == 1:
        return weight.T, 1
    eye = jnp.eye(G, dtype=weight.dtype)
    w_bd = (eye[:, None, :, None] * weight.T[None, :, None, :]).reshape(
        G * d_inp, G * d_model
    )
    return w_bd, G


def time_feature_embedding(x, weight, *, prepared=None, tile_m=4096, out_dtype=None):
    """x: (B, L, d_inp); weight: (d_model, d_inp) (PyTorch nn.Linear layout)."""
    B, L, d_inp = x.shape
    d_model = weight.shape[0]
    M = B * L
    out_dtype = x.dtype if out_dtype is None else out_dtype

    if prepared is None:
        prepared = prepare_time_feature_weight(weight)
    w_bd, G = prepared
    Kg, Ng = w_bd.shape
    assert Kg == G * d_inp and Ng == G * d_model

    # Pad row count to a multiple of G (zero rows; sliced off below). Tiny:
    # only the d_inp-wide input is touched.
    pad = (-M) % G
    x2d = x.reshape(M, d_inp)
    if pad:
        x2d = jnp.pad(x2d, ((0, pad), (0, 0)))
    Mp = M + pad
    Mr = Mp // G
    xg = x2d.reshape(Mr, Kg)

    # Row tile: amortize the ~0.35 us/step overhead with MiB-scale blocks,
    # capped by a VMEM budget that is safe on v7x (64 MiB physical VMEM per TC;
    # we keep double-buffered in+out under ~32 MiB).  Multiple of 16 so the
    # same tile is legal for f32 and bf16 outputs.
    bytes_per_row = 4 * 2 * (max(Kg, 128) + Ng)  # in + out, double-buffered, f32-sized
    vmem_rows = max(16, ((32 << 20) // bytes_per_row) // 16 * 16)
    target_rows = max(16, (tile_m // G) // 16 * 16)
    tile_rows = min(target_rows, vmem_rows)
    if Mr <= tile_rows:
        tile_rows = Mr  # full extent is always a legal block shape

    grid = (pl.cdiv(Mr, tile_rows),)

    out2d = pl.pallas_call(
        _linear_kernel,
        out_shape=jax.ShapeDtypeStruct((Mr, Ng), out_dtype),
        grid_spec=pltpu.PrefetchScalarGridSpec(
            num_scalar_prefetch=0,
            grid=grid,
            in_specs=[
                pl.BlockSpec((tile_rows, Kg), lambda i: (i, 0)),
                # Tiny weight, resident across the whole grid.
                pl.BlockSpec((Kg, Ng), lambda i: (0, 0)),
            ],
            out_specs=pl.BlockSpec((tile_rows, Ng), lambda i: (i, 0)),
        ),
        compiler_params=pltpu.CompilerParams(
            # Independent row blocks -> shard across TensorCores (v7x megacore).
            dimension_semantics=("parallel",),
            # Explicit cap: below v7x's 64 MiB physical VMEM, above the default
            # scoped limits on v5e (16 MiB) / v6e-v7x (32 MiB).
            vmem_limit_bytes=48 << 20,
        ),
    )(xg, w_bd)

    out = out2d.reshape(Mp, d_model)
    if pad:
        out = out[:M]
    return out.reshape(B, L, d_model)


def _reference(x, weight):
    return jnp.einsum("bld,nd->bln", x, weight)


if __name__ == "__main__":
    key = jax.random.PRNGKey(0)

    # (B, L, d_inp, d_model, tile_m, out_dtype)
    #  1) toy (freq='h' -> d_inp=4), grouped path, single block, f32
    #  2) grouped path, small tile_m -> multiple row tiles + partial last block
    #  3) d_model=96 -> generalized grouping (G=4, Ng=384), multi-tile
    #  4) B*L not a multiple of G -> zero-pad path, full-extent block
    #  5) bf16 output path (write-bandwidth optimization)
    cases = [
        (2, 8, 4, 32, 4096, jnp.float32),
        (2, 300, 4, 32, 64, jnp.float32),
        (2, 600, 6, 96, 256, jnp.float32),
        (3, 7, 4, 32, 4096, jnp.float32),
        (2, 300, 4, 32, 4096, jnp.bfloat16),
    ]

    ok = True
    for idx, (B, L, d_inp, d_model, tile_m, out_dtype) in enumerate(cases):
        kx, kw, key = jax.random.split(key, 3)
        x = jax.random.normal(kx, (B, L, d_inp), dtype=jnp.float32)
        weight = jax.random.normal(kw, (d_model, d_inp), dtype=jnp.float32) * 0.1

        # Weight prep done once per layer (outside the per-call hot path).
        prepared = prepare_time_feature_weight(weight)

        out = time_feature_embedding(
            x, weight, prepared=prepared, tile_m=tile_m, out_dtype=out_dtype
        )
        out = jax.block_until_ready(out)

        ref = _reference(x, weight)
        tol = 1e-4 if out_dtype == jnp.float32 else 3e-2
        good = out.shape == (B, L, d_model) and jnp.allclose(
            out.astype(jnp.float32), ref, atol=tol, rtol=tol
        )
        if not good:
            ok = False
            print(
                f"case {idx} mismatch: max err "
                f"{float(jnp.max(jnp.abs(out.astype(jnp.float32) - ref)))}"
            )

    assert ok
    print("KERNEL_OK")
</pallas_src>

<mosaic_0001>
module attributes {stable_mosaic.version = 11 : i64} {
  func.func @_linear_kernel(%arg0: i32, %arg1: memref<4x16xf32, #tpu.memory_space<vmem>>, %arg2: memref<16x128xf32, #tpu.memory_space<vmem>>, %arg3: memref<4x128xf32, #tpu.memory_space<vmem>>) attributes {dimension_semantics = [#tpu.dimension_semantics<parallel>], iteration_bounds = array<i64: 1>, scalar_prefetch = 0 : i64, scratch_operands = 0 : i64, tpu.core_type = #tpu.core_type<tc>, window_params = [{transform_indices = @transform_0, window_bounds = array<i64: 4, 16>}, {pipeline_mode = #tpu.pipeline_mode<synchronous>, transform_indices = @transform_1, window_bounds = array<i64: 16, 128>}, {transform_indices = @transform_2, window_bounds = array<i64: 4, 128>}]} {
    %c0 = arith.constant 0 : index
    %c0_0 = arith.constant 0 : index
    %0 = vector.load %arg1[%c0, %c0_0] : memref<4x16xf32, #tpu.memory_space<vmem>>, vector<4x16xf32>
    %c0_1 = arith.constant 0 : index
    %c0_2 = arith.constant 0 : index
    %1 = vector.load %arg2[%c0_1, %c0_2] : memref<16x128xf32, #tpu.memory_space<vmem>>, vector<16x128xf32>
    %cst = arith.constant dense<0.000000e+00> : vector<4x128xf32>
    %2 = tpu.matmul %0, %1, %cst {dimension_numbers = #tpu.dot_dimension_numbers<[1], [0], [0], [1], [0, 0, 1, 1], [], []>} : vector<4x16xf32>, vector<16x128xf32>, vector<4x128xf32> -> vector<4x128xf32>
    %c0_3 = arith.constant 0 : index
    %c0_4 = arith.constant 0 : index
    %3 = vector.load %arg3[%c0_3, %c0_4] : memref<4x128xf32, #tpu.memory_space<vmem>>, vector<4x128xf32>
    tpu.vector_store %arg3[%c0_3, %c0_4], %2 {strides = array<i32>} : memref<4x128xf32, #tpu.memory_space<vmem>>, vector<4x128xf32>,
    return
  }
  func.func @transform_0(%arg0: i32) -> (i32, i32) {
    %c0_i32 = arith.constant 0 : i32
    %c0_i32_0 = arith.constant 0 : i32
    return %arg0, %c0_i32 : i32, i32
  }
  func.func @transform_1(%arg0: i32) -> (i32, i32) {
    %c0_i32 = arith.constant 0 : i32
    %c0_i32_0 = arith.constant 0 : i32
    %c0_i32_1 = arith.constant 0 : i32
    return %c0_i32, %c0_i32_0 : i32, i32
  }
  func.func @transform_2(%arg0: i32) -> (i32, i32) {
    %c0_i32 = arith.constant 0 : i32
    %c0_i32_0 = arith.constant 0 : i32
    return %arg0, %c0_i32 : i32, i32
  }
}

</mosaic_0001>

<bundles_post_ra>
// kernel: tpu_custom_call.1
= control target key start
LH: loop header
LB: loop body
LE: loop exit
PB: predicated region body
PF: predicated region fallthrough
CT: control target
= control target key end

     0   :  { %7 = vsyncpa [#allocation3], 0  ;;  %s201_s0 = inlined_call_operand.hbm [shape: f32[4,16], index: 0, kind: input, shape index: {}]   ;;  %s202_s1 = inlined_call_operand.hbm [shape: f32[16,128], index: 1, kind: input, shape index: {}]   ;;  %s203_s2 = inlined_call_operand.hbm [shape: f32[4,128], index: 2, kind: output, shape index: {}]  }
   0x1   :  { %8 = vsyncpa [#allocation6], 0 }
   0x2   :  { %9 = vsyncpa [#allocation4], 0  ;;  %s15_s11 = sshll.u32 %s201_s0, 4  ;;  %s172_s12 = smov [#allocation2]   ;;  %s16_s11 = int_to_ptr.hbm [resolvable:$true] %s15_s11 }
   0x3   :  { %s17_s13 = sshll.u32 %s172_s12, 4  ;;  %s25_s16 = sshll.u32 %s202_s1, 4  ;;  %s18_s13 = int_to_ptr.vmem [resolvable:$true] %s17_s13  ;;  %s26_s16 = int_to_ptr.hbm [resolvable:$true] %s25_s16 }
   0x4   :  { %20 = dma.hbm_to_vmem [thread:$0]  %s16_s11, 64, %s18_s13, [#allocation3]  }
   0x5   :  { %s173_s17 = smov [#allocation5]   ;;  %s174_s19 = smov 128  }
   0x6   :  { %s27_s18 = sshll.u32 %s173_s17, 4  ;;  %s175_s20 = smov 8   ;;  %s28_s18 = int_to_ptr.vmem [resolvable:$true] %s27_s18 }
   0x7   :  { %33 = dma.hbm_to_vmem [thread:$0]  %s26_s16, 256, %s28_s18, [#allocation6], %s174_s19, %s174_s19, %s175_s20  }
   0x8   :  { %166 = dma.done.wait [#allocation3], 64  }
   0x9   :  { %167 = vsyncadd [#allocation3], 4294967232 }
   0xa   :  { %168 = dma.done.wait [#allocation6], 256  }
   0xb   :  { %169 = vsyncadd [#allocation6], 4294967040  ;;  %v44_v0 = vld [vmem:[#allocation5 + $0x8] sm:$0xff]  ;;  %v43_v1 = vld [vmem:[#allocation5] sm:$0xff]  ;;  %vm45_vm0 = vcmask 130048   ;;  %s176_s0 = smov [#allocation7]  }
   0xc   :  { %63 = vmatpush.msra.mxu0 %v44_v0  ;;  %v42_v2 = vld [vmem:[#allocation2] sm:$0xf]  ;;  %s75_s1 = sshll.u32 %s176_s0, 4  ;;  %s77_s23 = sshll.u32 %s203_s2, 4  ;;  %s76_s1 = int_to_ptr.vmem [resolvable:$true] %s75_s1  ;;  %s78_s23 = int_to_ptr.hbm [resolvable:$true] %s77_s23 }
   0xe   :  { %64 = vmatpush.msra.mxu0 %v43_v1 }
   0xf   :  { %88 = vmatmul.msk.f32.vlgmr.msra.gmra.mxu0 %vm45_vm0, %v42_v2 }
  0x8c   :  { %v66_v3 = vpop.f32.mrf.mxu0 }
  0x8d   :  { %69 = vst [vmem:[#allocation7] sm:$0xf] %v66_v3 }
  0x8e   :  { %80 = dma.vmem_to_hbm [thread:$0]  %s76_s1, 64, %s78_s23, [#allocation4]  }
  0x8f   :  { %170 = dma.done.wait [#allocation4], 64  }
  0x90   :  { %171 = vsyncadd [#allocation4], 4294967232 }
  0x91   :  { %85 = vsyncpa [#allocation3], 1 }
  0x92   :  { %86 = vsyncpa [#allocation6], 1 }
  0x93   :  { %87 = vsyncpa [#allocation4], 1 }

</bundles_post_ra>
